<compile_context>
chip_gen: v6e
topology: v6e:2x2x1
jax: 0.10.0
libtpu: 0.0.40
codegen_flags: <defaults>
</compile_context>

<pallas_src>
import jax
import jax.numpy as jnp
from jax.experimental import pallas as pl
from jax.experimental.pallas import tpu as pltpu


def _lora_linear_kernel(x_ref, at_ref, bt_ref, bias_ref, o_ref, t_acc_ref):
    # x_ref:    (tm, tk)       row tile of x, K chunk k
    # at_ref:   (tk, r_pad)    A^T (scaling pre-folded), K chunk k
    # bt_ref:   (r_pad, tn)    B^T output-column slice (MXU-native (K, N))
    # bias_ref: (1, tn)        f32 bias slice
    # o_ref:    (tm, tn)
    # t_acc_ref:(tm, r_pad)    f32 scratch accumulator for the tiny intermediate
    k = pl.program_id(2)

    @pl.when(k == 0)
    def _():
        t_acc_ref[...] = jnp.zeros_like(t_acc_ref)

    t_acc_ref[...] += jnp.dot(x_ref[...], at_ref[...],
                              preferred_element_type=jnp.float32)

    @pl.when(k == pl.num_programs(2) - 1)
    def _():
        y = jnp.dot(t_acc_ref[...], bt_ref[...],
                    preferred_element_type=jnp.float32)
        o_ref[...] = (y + bias_ref[...]).astype(o_ref.dtype)


def _round_up(x, m):
    return ((x + m - 1) // m) * m


def _vmem_capacity_bytes():
    try:
        cap = getattr(pltpu.get_tpu_info(), "vmem_capacity_bytes", None)
        if cap:
            return int(cap)
    except Exception:
        pass
    return 64 * 1024 * 1024  # conservative fallback: v7x per-TensorCore VMEM


def _pick_tile_n(n_pad):
    # Largest lane-dense tile (multiple of 128) that divides the padded width.
    for cand in (512, 384, 256, 128):
        if n_pad % cand == 0:
            return cand
    return 128  # unreachable: n_pad is a multiple of 128


def _pick_tile_k(k_pad, max_tk=2048):
    # Whole K when it is small; otherwise a 128-multiple chunk dividing K_pad.
    if k_pad <= max_tk:
        return k_pad
    tk = (max_tk // 128) * 128
    while tk > 128 and k_pad % tk != 0:
        tk -= 128
    return tk


def _pick_tile_m(m, tk, tn, r_pad, x_isz, w_isz, o_isz, budget):
    # Footprint: double-buffered x / out / A^T blocks, single-buffered B^T and
    # bias (constant block index), plus the f32 scratch accumulator.
    fixed = 2 * tk * r_pad * w_isz + r_pad * tn * w_isz + tn * 4
    per_row = 2 * tk * x_isz + 2 * tn * o_isz + r_pad * 4
    tm = (budget - fixed) // per_row
    tm = int(max(8, min(1024, (tm // 8) * 8)))
    return min(tm, _round_up(max(m, 1), 8))


def lora_linear(x, lora_A, lora_B, bias, scaling, compute_dtype=None):
    """x: (..., in_features) -> (..., out_features).

    lora_A: (r, in_features), lora_B: (out_features, r), bias: (out_features,).
    """
    in_features = x.shape[-1]
    out_features, r = lora_B.shape
    assert lora_A.shape == (r, in_features)
    assert bias.shape == (out_features,)

    lead_shape = x.shape[:-1]
    x2d = x.reshape(-1, in_features)
    M = x2d.shape[0]
    out_dtype = x.dtype

    # One-time layout prep outside the hot loop: scaling folded into A^T,
    # B pre-transposed to MXU-native (K, N), bias as an f32 row.
    a_t = (lora_A * jnp.asarray(scaling, lora_A.dtype)).T       # (in, r)
    b_t = lora_B.T                                               # (r, out)
    if compute_dtype is not None:
        x2d = x2d.astype(compute_dtype)
        a_t = a_t.astype(compute_dtype)
        b_t = b_t.astype(compute_dtype)
    bias_f32 = bias.astype(jnp.float32).reshape(1, out_features)

    # Zero-pad contraction / output dims to lane (128) quanta and r to the
    # sublane (8) quantum: numerically exact, makes every vld/vst lane-dense.
    K_pad = _round_up(in_features, 128)
    N_pad = _round_up(out_features, 128)
    r_pad = _round_up(r, 8)

    x_isz = jnp.dtype(x2d.dtype).itemsize
    w_isz = jnp.dtype(a_t.dtype).itemsize
    o_isz = jnp.dtype(out_dtype).itemsize

    tn = _pick_tile_n(N_pad)
    tk = _pick_tile_k(K_pad)

    vmem_cap = _vmem_capacity_bytes()
    budget = int(0.70 * vmem_cap)
    tm = _pick_tile_m(M, tk, tn, r_pad, x_isz, w_isz, o_isz, budget)

    # Megacore: guarantee at least one "parallel" axis has >= 2 blocks so
    # v7x's second TensorCore gets work (no-op on single-TC v5e/v6e).
    if pl.cdiv(M, tm) == 1 and N_pad // tn == 1 and tm > 8:
        tm = max(8, ((tm // 2 + 7) // 8) * 8)

    M_pad = pl.cdiv(M, tm) * tm

    x2d = jnp.pad(x2d, ((0, M_pad - M), (0, K_pad - in_features)))
    a_t = jnp.pad(a_t, ((0, K_pad - in_features), (0, r_pad - r)))
    b_t = jnp.pad(b_t, ((0, r_pad - r), (0, N_pad - out_features)))
    bias_f32 = jnp.pad(bias_f32, ((0, 0), (0, N_pad - out_features)))

    grid = (M_pad // tm, N_pad // tn, K_pad // tk)

    # Scoped VMEM limit from the actual tile footprint + headroom, kept below
    # the physical capacity so the compiler retains internal scratch room.
    used = (2 * tm * tk * x_isz + 2 * tk * r_pad * w_isz
            + r_pad * tn * w_isz + tn * 4
            + 2 * tm * tn * o_isz + tm * r_pad * 4)
    vmem_limit = int(min(0.9 * vmem_cap, max(used + (8 << 20), 32 << 20)))

    out2d = pl.pallas_call(
        _lora_linear_kernel,
        out_shape=jax.ShapeDtypeStruct((M_pad, N_pad), out_dtype),
        grid_spec=pltpu.PrefetchScalarGridSpec(
            num_scalar_prefetch=0,
            grid=grid,
            in_specs=[
                pl.BlockSpec((tm, tk), lambda i, j, k: (i, k)),      # x rows
                pl.BlockSpec((tk, r_pad), lambda i, j, k: (k, 0)),   # A^T * s
                pl.BlockSpec((r_pad, tn), lambda i, j, k: (0, j)),   # B^T cols
                pl.BlockSpec((1, tn), lambda i, j, k: (0, j)),       # bias
            ],
            out_specs=pl.BlockSpec((tm, tn), lambda i, j, k: (i, j)),
            scratch_shapes=[pltpu.VMEM((tm, r_pad), jnp.float32)],
        ),
        compiler_params=pltpu.CompilerParams(
            dimension_semantics=("parallel", "parallel", "arbitrary"),
            vmem_limit_bytes=vmem_limit),
    )(x2d, a_t, b_t, bias_f32)

    out2d = out2d[:M, :out_features]
    return out2d.reshape(*lead_shape, out_features)


if __name__ == "__main__":
    # Small shapes consistent with a PhysMLE LoRA adapter (gamma=8,
    # lora_alpha=16 -> scaling=2) wrapping a small linear / conv-as-matmul.
    # in/out = 96 intentionally not 128-aligned to exercise the padding paths.
    batch, seq = 2, 8
    in_features, out_features, r, lora_alpha = 96, 96, 8, 16
    scaling = lora_alpha / r

    key = jax.random.PRNGKey(0)
    kx, ka, kb, kbias = jax.random.split(key, 4)

    x = jax.random.normal(kx, (batch, seq, in_features), dtype=jnp.float32)

    # kaiming_uniform_(a=sqrt(5)) bound = 1/sqrt(fan_in).  reset_parameters()
    # zeros lora_B; use small random values instead so the matmul path is
    # actually exercised.
    bound_a = 1.0 / (in_features ** 0.5)
    lora_A = jax.random.uniform(ka, (r, in_features), jnp.float32,
                                minval=-bound_a, maxval=bound_a)
    lora_B = 0.1 * jax.random.normal(kb, (out_features, r), dtype=jnp.float32)
    bias = 0.1 * jax.random.normal(kbias, (out_features,), dtype=jnp.float32)

    out = lora_linear(x, lora_A, lora_B, bias, scaling)
    out = jax.block_until_ready(out)

    # Pure-JAX reference: F.linear(x, (B@A)*scaling, bias).  The kernel uses
    # the reassociated factored form -> only tiny f32 rounding differences.
    w_eff = (lora_B @ lora_A) * scaling
    ref = x @ w_eff.T + bias

    assert out.shape == (batch, seq, out_features)
    assert jnp.allclose(out, ref, atol=1e-5, rtol=1e-5), "mismatch vs reference"
    print("KERNEL_OK")
</pallas_src>

<mosaic_0001>
module attributes {stable_mosaic.version = 11 : i64} {
  func.func @_lora_linear_kernel(%arg0: i32, %arg1: i32, %arg2: i32, %arg3: memref<8x128xf32, #tpu.memory_space<vmem>>, %arg4: memref<128x8xf32, #tpu.memory_space<vmem>>, %arg5: memref<8x128xf32, #tpu.memory_space<vmem>>, %arg6: memref<1x128xf32, #tpu.memory_space<vmem>>, %arg7: memref<8x128xf32, #tpu.memory_space<vmem>>, %arg8: memref<8x8xf32, #tpu.memory_space<vmem>>) attributes {dimension_semantics = [#tpu.dimension_semantics<parallel>, #tpu.dimension_semantics<parallel>, #tpu.dimension_semantics<arbitrary>], iteration_bounds = array<i64: 2, 1, 1>, scalar_prefetch = 0 : i64, scratch_operands = 1 : i64, tpu.core_type = #tpu.core_type<tc>, window_params = [{transform_indices = @transform_0, window_bounds = array<i64: 8, 128>}, {transform_indices = @transform_1, window_bounds = array<i64: 128, 8>}, {transform_indices = @transform_2, window_bounds = array<i64: 8, 128>}, {transform_indices = @transform_3, window_bounds = array<i64: 1, 128>}, {transform_indices = @transform_4, window_bounds = array<i64: 8, 128>}]} {
    %c0_i32 = arith.constant 0 : i32
    %0 = arith.cmpi eq, %arg2, %c0_i32 : i32
    %1 = arith.extui %0 : i1 to i32
    %c0_i32_0 = arith.constant 0 : i32
    %2 = arith.cmpi ne, %1, %c0_i32_0 : i32
    scf.if %2 {
      %cst_10 = arith.constant 0.000000e+00 : f32
      %12 = vector.broadcast %cst_10 : f32 to vector<8x8xf32>
      %c0_11 = arith.constant 0 : index
      %c0_12 = arith.constant 0 : index
      %13 = vector.load %arg8[%c0_11, %c0_12] : memref<8x8xf32, #tpu.memory_space<vmem>>, vector<8x8xf32>
      tpu.vector_store %arg8[%c0_11, %c0_12], %12 {strides = array<i32>} : memref<8x8xf32, #tpu.memory_space<vmem>>, vector<8x8xf32>,
    } else {
    }
    %c0 = arith.constant 0 : index
    %c0_1 = arith.constant 0 : index
    %3 = vector.load %arg8[%c0, %c0_1] : memref<8x8xf32, #tpu.memory_space<vmem>>, vector<8x8xf32>
    %c0_2 = arith.constant 0 : index
    %c0_3 = arith.constant 0 : index
    %4 = vector.load %arg3[%c0_2, %c0_3] : memref<8x128xf32, #tpu.memory_space<vmem>>, vector<8x128xf32>
    %c0_4 = arith.constant 0 : index
    %c0_5 = arith.constant 0 : index
    %5 = vector.load %arg4[%c0_4, %c0_5] : memref<128x8xf32, #tpu.memory_space<vmem>>, vector<128x8xf32>
    %cst = arith.constant dense<0.000000e+00> : vector<8x8xf32>
    %6 = tpu.matmul %4, %5, %cst {dimension_numbers = #tpu.dot_dimension_numbers<[1], [0], [0], [1], [0, 0, 1, 1], [], []>} : vector<8x128xf32>, vector<128x8xf32>, vector<8x8xf32> -> vector<8x8xf32>
    %7 = arith.addf %3, %6 : vector<8x8xf32>
    %c0_6 = arith.constant 0 : index
    %c0_7 = arith.constant 0 : index
    %8 = vector.load %arg8[%c0_6, %c0_7] : memref<8x8xf32, #tpu.memory_space<vmem>>, vector<8x8xf32>
    tpu.vector_store %arg8[%c0_6, %c0_7], %7 {strides = array<i32>} : memref<8x8xf32, #tpu.memory_space<vmem>>, vector<8x8xf32>,
    %c0_i32_8 = arith.constant 0 : i32
    %9 = arith.cmpi eq, %arg2, %c0_i32_8 : i32
    %10 = arith.extui %9 : i1 to i32
    %c0_i32_9 = arith.constant 0 : i32
    %11 = arith.cmpi ne, %10, %c0_i32_9 : i32
    scf.if %11 {
      %c0_10 = arith.constant 0 : index
      %c0_11 = arith.constant 0 : index
      %12 = vector.load %arg8[%c0_10, %c0_11] : memref<8x8xf32, #tpu.memory_space<vmem>>, vector<8x8xf32>
      %c0_12 = arith.constant 0 : index
      %c0_13 = arith.constant 0 : index
      %13 = vector.load %arg5[%c0_12, %c0_13] : memref<8x128xf32, #tpu.memory_space<vmem>>, vector<8x128xf32>
      %cst_14 = arith.constant dense<0.000000e+00> : vector<8x128xf32>
      %14 = tpu.matmul %12, %13, %cst_14 {dimension_numbers = #tpu.dot_dimension_numbers<[1], [0], [0], [1], [0, 0, 1, 1], [], []>} : vector<8x8xf32>, vector<8x128xf32>, vector<8x128xf32> -> vector<8x128xf32>
      %c0_15 = arith.constant 0 : index
      %c0_16 = arith.constant 0 : index
      %15 = vector.load %arg6[%c0_15, %c0_16] : memref<1x128xf32, #tpu.memory_space<vmem>>, vector<1x128xf32>
      %16 = vector.broadcast %15 : vector<1x128xf32> to vector<8x128xf32>
      %17 = arith.addf %14, %16 : vector<8x128xf32>
      %c0_17 = arith.constant 0 : index
      %c0_18 = arith.constant 0 : index
      %18 = vector.load %arg7[%c0_17, %c0_18] : memref<8x128xf32, #tpu.memory_space<vmem>>, vector<8x128xf32>
      tpu.vector_store %arg7[%c0_17, %c0_18], %17 {strides = array<i32>} : memref<8x128xf32, #tpu.memory_space<vmem>>, vector<8x128xf32>,
    } else {
    }
    return
  }
  func.func @transform_0(%arg0: i32, %arg1: i32, %arg2: i32) -> (i32, i32) {
    %c0_i32 = arith.constant 0 : i32
    return %arg0, %arg2 : i32, i32
  }
  func.func @transform_1(%arg0: i32, %arg1: i32, %arg2: i32) -> (i32, i32) {
    %c0_i32 = arith.constant 0 : i32
    %c0_i32_0 = arith.constant 0 : i32
    return %arg2, %c0_i32 : i32, i32
  }
  func.func @transform_2(%arg0: i32, %arg1: i32, %arg2: i32) -> (i32, i32) {
    %c0_i32 = arith.constant 0 : i32
    %c0_i32_0 = arith.constant 0 : i32
    return %c0_i32, %arg1 : i32, i32
  }
  func.func @transform_3(%arg0: i32, %arg1: i32, %arg2: i32) -> (i32, i32) {
    %c0_i32 = arith.constant 0 : i32
    %c0_i32_0 = arith.constant 0 : i32
    return %c0_i32, %arg1 : i32, i32
  }
  func.func @transform_4(%arg0: i32, %arg1: i32, %arg2: i32) -> (i32, i32) {
    %c0_i32 = arith.constant 0 : i32
    return %arg0, %arg1 : i32, i32
  }
}

</mosaic_0001>

<bundles_post_ra>
// kernel: tpu_custom_call.1
= control target key start
LH: loop header
LB: loop body
LE: loop exit
PB: predicated region body
PF: predicated region fallthrough
CT: control target
= control target key end

     0   :  { %9 = vsyncpa [#allocation4], 0  ;;  %s992_s0 = inlined_call_operand.vmem [shape: f32[16,128], index: 0, kind: input, shape index: {}]   ;;  %s993_s1 = inlined_call_operand.vmem [shape: f32[128,8], index: 1, kind: input, shape index: {}]   ;;  %s994_s2 = inlined_call_operand.vmem [shape: f32[8,128], index: 2, kind: input, shape index: {}]   ;;  %s995_s3 = inlined_call_operand.vmem [shape: f32[1,128], index: 3, kind: input, shape index: {}]   ;;  %s996_s4 = inlined_call_operand.hbm [shape: f32[16,128], index: 4, kind: output, shape index: {}]  }
   0x1   :  { %11 = vsyncpa [#allocation4 + $0x1], 0  ;;  %s830_s15 = smov 0   ;;  %s832_s16 = smov 0  }
   0x2   :  { %s834_s17 = smov 0   ;;  %s836_s18 = smov 0  }
   0x3   :  { %s838_s19 = smov 0   ;;  %s840_s20 = smov 0  }
   0x4 LB: > { %s592_s21 = sadd.s32 4294967295, %s800_s20   ;;  %s593_s22 = sadd.s32 4294967294, %s800_s20   ;;  %s800_s20 = sphi %s840_s20, %s17_s20   ;;  %s796_s19 = sphi %s838_s19, %s1003_s19   ;;  %s792_s18 = sphi %s836_s18, %s1002_s18   ;;  %s788_s17 = sphi %s834_s17, %s1001_s17   ;;  %s784_s16 = sphi %s832_s16, %s1000_s16   ;;  %s780_s15 = sphi %s830_s15, %s999_s15  }
   0x5   : > { %s36_s23 = sadd.s32 1, %s796_s19  ;;  %s151_s24 = sadd.s32 1, %s788_s17 }
   0x6   : > { %p38_p0 = scmp.ge.s32.totalorder %s36_s23, 2  ;;  %p161_p1 = scmp.ne.s32.totalorder %s788_s17, %s784_s16 }
   0x7   : > { %p162_p2 = scmp.eq.s32.totalorder %s592_s21, 1  ;;  %p167_p3 = scmp.ne.s32.totalorder %s784_s16, %s780_s15 }
   0x8   : > { %s1005_s23 = smov (%p38_p0, %s36_s23), 0  ;;  %p168_p5 = scmp.eq.s32.totalorder %s593_s22, 1 }
   0x9   : > { %p870_p4 = por %p162_p2, %p161_p1  ;;  %s146_s26 = ssub.s32 %s796_s19, %s1005_s23 }
   0xa   : > { %p599_p6 = scmp.ge.s32.totalorder %s800_s20, 1  ;;  %p149_p7 = scmp.eq.s32.totalorder %s146_s26, 0 }
   0xb   : > { %p877_p8 = por %p168_p5, %p167_p3  ;;  %p218_p9 = scmp.lt.s32.totalorder %s800_s20, 3 }
   0xc   : > { %s883_s28 = scalar_select %p149_p7, %s788_s17, %s151_s24  }
   0xd   : > { %p219_p10 = pnand %p599_p6, %p218_p9 }
   0xe   : > { %p258_p11 = scmp.lt.s32.totalorder (!%p219_p10), %s792_s18, 1  ;;  %s255_s10 = sand.u32 (!%p219_p10), 1, %s784_s16  }
   0xf   : > { %222 = sbr.rel (%p219_p10) target bundleno = 464 (0x1d0), region = 36  ;;  %s600_s11 = sshll.u32 (!%p219_p10), %s255_s10, 3 }
  0x10   : > { %s257_s21 = scalar_lea.vmem (!%p219_p10), [#allocation3], %s600_s11  ;;  %s462_s30 = scalar_lea.sflag (!%p219_p10), [#allocation4], %s255_s10 }
  0x11   : > { %s476_s22 = sshll.u32 (!%p219_p10), %s257_s21, 4  ;;  %s804_s6 = smov (!%p219_p10), [#allocation3]   ;;  %s477_s22 = int_to_ptr.vmem [resolvable:$true] %s476_s22 }
  0x14   : > { %v301_v0 = vld [vmem:[%s993_s1 + $0x78] sm:$0xff]  ;;  %v802_v1 = vmov 0.0   ;;  %v300_v2 = vld [vmem:[%s993_s1 + $0x70] sm:$0xff]  ;;  %vm803_vm0 = vmmov 0   ;;  %vm282_vm1 = vcmask 64512   ;;  %v299_v3 = vld [vmem:[%s993_s1 + $0x68] sm:$0xff] }
  0x15   : > { %627 = vmatprep.subr.mxu0 %v802_v1  ;;  %659 = vmatprep.mubr.msk.f32.mxu0 %vm803_vm0, %v802_v1  ;;  %283 = vst.msk [vmem:[#allocation2] sm:$0xff] %vm282_vm1, %v802_v1  ;;  %v298_v4 = vld [vmem:[%s993_s1 + $0x60] sm:$0xff]  ;;  %v297_v5 = vld [vmem:[%s993_s1 + $0x58] sm:$0xff]  ;;  %v296_v6 = vld [vmem:[%s993_s1 + $0x50] sm:$0xff]  ;;  %s259_s9 = scalar_select %p258_p11, %s792_s18, 1 }
  0x16   : > { %628 = vmatpush3.msra.mxu0 %v301_v0  ;;  %662 = vmatprep.subr.mxu1 %v802_v1  ;;  %v295_v7 = vld [vmem:[%s993_s1 + $0x48] sm:$0xff]  ;;  %v294_v8 = vld [vmem:[%s993_s1 + $0x40] sm:$0xff]  ;;  %v293_v9 = vld [vmem:[%s993_s1 + $0x38] sm:$0xff] }
  0x17   : > { %629 = vmatprep.subr.mxu0 %v802_v1  ;;  %664 = vmatprep.mubr.msk.f32.mxu1 %vm803_vm0, %v802_v1  ;;  %v292_v10 = vld [vmem:[%s993_s1 + $0x30] sm:$0xff]  ;;  %v291_v11 = vld [vmem:[%s993_s1 + $0x28] sm:$0xff]  ;;  %v290_v12 = vld [vmem:[%s993_s1 + $0x20] sm:$0xff]  ;;  %s601_s14 = sshll.u32 %s259_s9, 3 }
  0x18   : > { %630 = vmatpush3.msra.mxu0 %v300_v2  ;;  %v289_v13 = vld [vmem:[%s993_s1 + $0x18] sm:$0xff]  ;;  %v288_v14 = vld [vmem:[%s993_s1 + $0x10] sm:$0xff]  ;;  %v287_v15 = vld [vmem:[%s993_s1 + $0x8] sm:$0xff]  ;;  %s264_s5 = scalar_lea.vmem %s992_s0, %s601_s14  ;;  %s605_s14 = sshll.u32 %s792_s18, 7 }
  0x19   : > { %631 = vmatprep.subr.mxu0 %v802_v1  ;;  %v286_v16 = vld [vmem:[%s993_s1] sm:$0xff]  ;;  %s952_s29 = scalar_lea.hbm %s996_s4, %s605_s14  ;;  %s728_s18 = sshll.u32 %s804_s6, 4  ;;  %s729_s18 = int_to_ptr.vmem [resolvable:$false] %s728_s18 }
  0x1a   : > { %632 = vmatpush3.msra.mxu0 %v299_v3  ;;  %v285_v17 = vld [vmem:[%s264_s5] sm:$0xff]  ;;  %s724_s5 = scalar_lea.vmem %s477_s22, 128  ;;  %s730_s7 = scalar_lea.vmem %s729_s18, 256 }
  0x1b   : > { %633 = vmatprep.subr.mxu0 %v802_v1  ;;  %v379_v18 = vld [vmem:[%s994_s2] sm:$0xff]  ;;  %p725_p12 = scmp.ne.s32.totalorder %s477_s22, %s724_s5  ;;  %p731_p1 = scmp.lt.s32.totalorder %s477_s22, %s729_s18 }
  0x1c   : > { %634 = vmatpush3.msra.mxu0 %v298_v4  ;;  %663 = vmatpush3.msra.mxu1 %v379_v18  ;;  %v284_v19 = vld [vmem:[#allocation2] sm:$0xff]  ;;  %p732_p2 = scmp.lt.s32.totalorder %s730_s7, %s724_s5 }
  0x1d   : > { %635 = vmatprep.subr.mxu0 %v802_v1  ;;  %v602_v24 = vld [vmem:[%s995_s3] ss:$0 sm:$0xff]  ;;  %p726_p13 = pnand %p725_p12, %p870_p4 }
  0x1e   : > { %636 = vmatpush3.msra.mxu0 %v297_v5  ;;  %p733_p3 = por %p732_p2, %p731_p1 }
  0x1f   : > { %637 = vmatprep.subr.mxu0 %v802_v1  ;;  %p727_p0 = pneg %p726_p13 }
  0x20   : > { %638 = vmatpush3.msra.mxu0 %v296_v6 }
  0x21   : > { %639 = vmatprep.subr.mxu0 %v802_v1  ;;  %p734_p5 = pnand %p733_p3, %p727_p0 }
  0x22   : > { %640 = vmatpush3.msra.mxu0 %v295_v7 }
  0x23   : > { %641 = vmatprep.subr.mxu0 %v802_v1 }
  0x24   : > { %642 = vmatpush3.msra.mxu0 %v294_v8 }
  0x25   : > { %643 = vmatprep.subr.mxu0 %v802_v1 }
  0x26   : > { %644 = vmatpush3.msra.mxu0 %v293_v9 }
  0x27   : > { %645 = vmatprep.subr.mxu0 %v802_v1 }
  0x28   : > { %646 = vmatpush3.msra.mxu0 %v292_v10 }
  0x29   : > { %647 = vmatprep.subr.mxu0 %v802_v1 }
  0x2a   : > { %648 = vmatpush3.msra.mxu0 %v291_v11 }
  0x2b   : > { %649 = vmatprep.subr.mxu0 %v802_v1 }
  0x2c   : > { %650 = vmatpush3.msra.mxu0 %v290_v12 }
  0x2d   : > { %651 = vmatprep.subr.mxu0 %v802_v1 }
  0x2e   : > { %652 = vmatpush3.msra.mxu0 %v289_v13 }
  0x2f   : > { %653 = vmatprep.subr.mxu0 %v802_v1 }
  0x30   : > { %654 = vmatpush3.msra.mxu0 %v288_v14 }
  0x31   : > { %655 = vmatprep.subr.mxu0 %v802_v1 }
  0x32   : > { %656 = vmatpush3.msra.mxu0 %v287_v15 }
  0x33   : > { %657 = vmatprep.subr.mxu0 %v802_v1 }
  0x34   : > { %658 = vmatpush3.msra.mxu0 %v286_v16 }
  0x35   : > { %660 = vmatmul.mubr.f32.vlgmr.msra.gmra.mxu0 %v285_v17 }
  0xf5   : > { %v368_v20 = vpop.f32.mrf.mxu0 }
  0xf6   : > { %v372_v21 = vadd.f32 %v368_v20, %v284_v19 }
  0xf7   : > { %v661_v22 = vpop.f32.mrf.mxu0 }
  0xf8   : > { %374 = vst.msk [vmem:[#allocation2] sm:$0xff] %vm282_vm1, %v372_v21 }
  0xff   : > { %v378_v23 = vld [vmem:[#allocation2] sm:$0xff] }
 0x100   : > { %665 = vmatmul.mubr.msk.f32.vlgmr.msra.gmra.mxu1 %vm282_vm1, %v378_v23 }
 0x1c0   : > { %v456_v25 = vpop.f32.mrf.mxu1 }
 0x1c1   : > { %v457_v26 = vadd.f32 %v602_v24, %v456_v25 }
 0x1c2   : > { %v666_v27 = vpop.f32.mrf.mxu1 }
 0x1c3   : > { %460 = vst [vmem:[%s257_s21] sm:$0xff] %v457_v26 }
 0x1c4   : > { %737 = shalt.err (!%p734_p5)
}
 0x1c5   : > { %s738_s8 = scalar_lea.hbm %s952_s29, 128  ;;  %s742_s11 = scalar_lea.hbm %s996_s4, 256 }
 0x1c6   : > { %p739_p6 = scmp.ne.s32.totalorder %s952_s29, %s738_s8  ;;  %p743_p10 = scmp.lt.s32.totalorder %s952_s29, %s996_s4 }
 0x1c7   : > { %p744_p11 = scmp.lt.s32.totalorder %s742_s11, %s738_s8 }
 0x1c8   : > { %p740_p7 = pnand %p739_p6, %p870_p4 }
 0x1c9   : > { %p745_p12 = por %p744_p11, %p743_p10 }
 0x1ca   : > { %p741_p9 = pneg %p740_p7 }
 0x1cc   : > { %p746_p13 = pnand %p745_p12, %p741_p9 }
 0x1ce   : > { %749 = shalt.err (!%p746_p13)
}
 0x1cf   : > { %667 = dma.vmem_to_hbm [thread:$0]  (%p870_p4), %s477_s22, 128, %s952_s29, %s462_s30  }
 0x1d0 PF: > { %p673_p0 = scmp.ge.s32.totalorder %s800_s20, 2  ;;  %s488_s14 = sand.u32 1, %s780_s15  }
 0x1d1   : > { %s489_s21 = scalar_lea.sflag [#allocation4], %s488_s14 }
 0x1d2   : > { %p670_p1 = pnand %p673_p0, %p877_p8 }
 0x1d4   : > { %p671_p2 = pneg %p670_p1 }
 0x1d6   : > { %775 = dma.done.wait (%p671_p2), %s489_s21, 128  }
 0x1d7   : > { %777 = vsyncadd (%p671_p2), %s489_s21, 4294967168  ;;  %s17_s20 = sadd.s32 1, %s800_s20   ;;  %s999_s15 = smov %s784_s16 }
 0x1d8   : > { %p14_p3 = scmp.ge.s32.totalorder %s17_s20, 4   ;;  %s1000_s16 = smov %s788_s17 }
 0x1d9   : > { %s1001_s17 = smov %s883_s28  ;;  %s1002_s18 = smov %s796_s19 }
 0x1da   : > { %s1003_s19 = smov %s1005_s23  ;;  %16 = sbr.rel (!%p14_p3) target bundleno = 4 (0x4), region = 88 }
 0x1df   :  { %494 = vsyncpa [#allocation4], 1 }
 0x1e0   :  { %496 = vsyncpa [#allocation4 + $0x1], 1 }

</bundles_post_ra>
